<compile_context>
chip_gen: v6e
topology: v6e:2x2x1
jax: 0.10.0
libtpu: 0.0.40
codegen_flags: <defaults>
</compile_context>

<pallas_src>
import jax
import jax.numpy as jnp
from jax.experimental import pallas as pl
from jax.experimental.pallas import tpu as pltpu


def _round_up(x, m):
    return (x + m - 1) // m * m


def _ff_kernel(w1_ref, rel_ref, w1a_ref, w1b_ref, b1_ref, w2_ref, b2_ref, o_ref):
    # w1_ref : (TB, emb_dim)        f32 (streamed per batch tile)
    # rel_ref: (TB, emb_dim_rels)   f32 (gathered relation embeddings, streamed)
    # w1a_ref: (emb_dim, Hp)        bf16  VMEM-resident
    # w1b_ref: (emb_dim_rels, Hp)   bf16  VMEM-resident
    # b1_ref : (1, Hp)              f32   VMEM-resident
    # w2_ref : (Hp, emb_dim)        bf16  VMEM-resident
    # b2_ref : (1, emb_dim)         f32   VMEM-resident
    a = w1_ref[...].astype(jnp.bfloat16)
    r = rel_ref[...].astype(jnp.bfloat16)
    # First linear layer: split matmul replaces concat([w1, rel_emb]) @ W1.
    h = jnp.dot(a, w1a_ref[...], preferred_element_type=jnp.float32)
    h = h + jnp.dot(r, w1b_ref[...], preferred_element_type=jnp.float32)
    h = jax.nn.sigmoid(h + b1_ref[...])            # non_lin=True, 'sigmoid'
    # TODO(synk): dropout with p > 0 not implemented (module default p=0 -> identity)
    out = jnp.dot(h.astype(jnp.bfloat16), w2_ref[...],
                  preferred_element_type=jnp.float32) + b2_ref[...]
    o_ref[...] = out.astype(o_ref.dtype)


def relation_feedforward(w1, rel, params, *, block_b=256, out_dtype=jnp.float32):
    """w1: (B, emb_dim) float32; rel: (B, 1) or (B,) int32."""
    B, emb_dim = w1.shape
    rel_idx = rel.reshape(-1)                                   # safe "squeeze" (B == 1 ok)
    rel_emb = jnp.take(params["emb_table"], rel_idx, axis=0)    # (B, emb_dim_rels)
    emb_dim_rels = rel_emb.shape[1]
    hp = params["w1a"].shape[1]                                 # hidden dim, padded to 128

    # Batch tile: multiple of 8 sublanes, no larger than the (padded) batch.
    # On v7x (64 MiB VMEM) use a smaller block_b if batch tiles get very large.
    tb = min(block_b, _round_up(B, 8))
    bp = _round_up(B, tb)
    if bp != B:
        w1 = jnp.pad(w1, ((0, bp - B), (0, 0)))
        rel_emb = jnp.pad(rel_emb, ((0, bp - B), (0, 0)))
    grid = (bp // tb,)

    cost = pl.CostEstimate(
        flops=2 * bp * hp * (emb_dim + emb_dim_rels + emb_dim),
        transcendentals=bp * hp,
        bytes_accessed=(4 * bp * (2 * emb_dim + emb_dim_rels)                  # activations
                        + 2 * hp * (emb_dim + emb_dim_rels + emb_dim)          # bf16 weights
                        + 4 * (hp + emb_dim)),                                 # biases
    )

    out = pl.pallas_call(
        _ff_kernel,
        out_shape=jax.ShapeDtypeStruct((bp, emb_dim), out_dtype),
        grid=grid,
        in_specs=[
            pl.BlockSpec((tb, emb_dim), lambda i: (i, 0)),        # w1      (streamed)
            pl.BlockSpec((tb, emb_dim_rels), lambda i: (i, 0)),   # rel_emb (streamed)
            pl.BlockSpec((emb_dim, hp), lambda i: (0, 0)),        # W1a     (resident)
            pl.BlockSpec((emb_dim_rels, hp), lambda i: (0, 0)),   # W1b     (resident)
            pl.BlockSpec((1, hp), lambda i: (0, 0)),              # b1      (resident)
            pl.BlockSpec((hp, emb_dim), lambda i: (0, 0)),        # W2      (resident)
            pl.BlockSpec((1, emb_dim), lambda i: (0, 0)),         # b2      (resident)
        ],
        out_specs=pl.BlockSpec((tb, emb_dim), lambda i: (i, 0)),
        compiler_params=pltpu.CompilerParams(
            dimension_semantics=("parallel",),   # megacore-shard batch (v7x: 2 TCs)
        ),
        cost_estimate=cost,
    )(w1, rel_emb, params["w1a"], params["w1b"], params["b1"],
      params["w2"], params["b2"])

    return out[:B] if bp != B else out


def init_params(key, emb_dim, emb_dim_rels, hidden_dim, relation_nr):
    k0, k1, k2, k3, k4 = jax.random.split(key, 5)
    hp = _round_up(hidden_dim, 128)          # lane-dense hidden dim

    # nn.Embedding(relation_nr, emb_dim_rels)
    emb_table = jax.random.normal(k0, (relation_nr, emb_dim_rels), jnp.float32)

    # nn.Linear(emb_dim + emb_dim_rels, hidden_dim), stored transposed [in, out]
    w_hid = jax.random.normal(k1, (emb_dim + emb_dim_rels, hidden_dim), jnp.float32) * 0.1
    b_hid = jax.random.normal(k2, (hidden_dim,), jnp.float32) * 0.1
    # nn.Linear(hidden_dim, emb_dim), stored transposed [in, out]
    w_out = jax.random.normal(k3, (hidden_dim, emb_dim), jnp.float32) * 0.1
    b_out = jax.random.normal(k4, (emb_dim,), jnp.float32) * 0.1

    # Split W1 rows (removes the runtime concat) and zero-pad the hidden dim.
    pad_h = hp - hidden_dim
    w1a = jnp.pad(w_hid[:emb_dim], ((0, 0), (0, pad_h)))
    w1b = jnp.pad(w_hid[emb_dim:], ((0, 0), (0, pad_h)))
    b1 = jnp.pad(b_hid, (0, pad_h)).reshape(1, hp)
    w2 = jnp.pad(w_out, ((0, pad_h), (0, 0)))   # zero pad rows: 0.5 pad-sigmoid can't leak
    b2 = b_out.reshape(1, emb_dim)

    return {
        "emb_table": emb_table,
        "w1a": w1a.astype(jnp.bfloat16),
        "w1b": w1b.astype(jnp.bfloat16),
        "b1": b1,
        "w2": w2.astype(jnp.bfloat16),
        "b2": b2,
        # un-padded / un-split f32 originals, kept only for the reference check
        "w_hid_f32": w_hid, "b_hid_f32": b_hid,
        "w_out_f32": w_out, "b_out_f32": b_out,
    }


def reference_bf16(w1, rel, params):
    """Structural twin of the kernel path (bf16 MXU inputs, f32 accumulation)."""
    rel_emb = jnp.take(params["emb_table"], rel.reshape(-1), axis=0)
    h = (jnp.dot(w1.astype(jnp.bfloat16), params["w1a"],
                 preferred_element_type=jnp.float32)
         + jnp.dot(rel_emb.astype(jnp.bfloat16), params["w1b"],
                   preferred_element_type=jnp.float32)
         + params["b1"])
    h = jax.nn.sigmoid(h)
    return jnp.dot(h.astype(jnp.bfloat16), params["w2"],
                   preferred_element_type=jnp.float32) + params["b2"]


def reference_f32(w1, rel, params):
    """Pure-f32 math reference matching the PyTorch module."""
    rel_emb = jnp.take(params["emb_table"], rel.reshape(-1), axis=0)
    x = jnp.concatenate([w1, rel_emb], axis=1)
    h = jax.nn.sigmoid(x @ params["w_hid_f32"] + params["b_hid_f32"])
    return h @ params["w_out_f32"] + params["b_out_f32"]


if __name__ == "__main__":
    # Small shapes consistent with the module: layers=1, dropout=0, sigmoid.
    B, emb_dim, emb_dim_rels, hidden_dim, relation_nr = 50, 32, 16, 64, 10

    key = jax.random.PRNGKey(0)
    kp, kw, kr = jax.random.split(key, 3)
    params = init_params(kp, emb_dim, emb_dim_rels, hidden_dim, relation_nr)

    w1 = jax.random.normal(kw, (B, emb_dim), jnp.float32)              # batch['w1']
    rel = jax.random.randint(kr, (B, 1), 0, relation_nr, jnp.int32)    # batch['rel']

    # block_b=16 -> 4 batch tiles (exercises the grid + the uneven-batch pad path)
    out = relation_feedforward(w1, rel, params, block_b=16)
    out = jax.block_until_ready(out)
    assert out.shape == (B, emb_dim)

    ref_q = reference_bf16(w1, rel, params)   # same bf16/f32-accum path as kernel
    ref_f = reference_f32(w1, rel, params)    # original f32 module semantics
    assert jnp.allclose(out, ref_q, atol=1e-2, rtol=1e-2), "mismatch vs bf16-path reference"
    assert jnp.allclose(out, ref_f, atol=5e-2, rtol=5e-2), "mismatch vs f32 reference"

    print("KERNEL_OK")
</pallas_src>

<mosaic_0001>
module attributes {stable_mosaic.version = 11 : i64} {
  func.func @_ff_kernel(%arg0: i32, %arg1: memref<16x32xf32, #tpu.memory_space<vmem>>, %arg2: memref<16x16xf32, #tpu.memory_space<vmem>>, %arg3: memref<32x128xbf16, #tpu.memory_space<vmem>>, %arg4: memref<16x128xbf16, #tpu.memory_space<vmem>>, %arg5: memref<1x128xf32, #tpu.memory_space<vmem>>, %arg6: memref<128x32xbf16, #tpu.memory_space<vmem>>, %arg7: memref<1x32xf32, #tpu.memory_space<vmem>>, %arg8: memref<16x32xf32, #tpu.memory_space<vmem>>) attributes {dimension_semantics = [#tpu.dimension_semantics<parallel>], iteration_bounds = array<i64: 4>, scalar_prefetch = 0 : i64, scratch_operands = 0 : i64, tpu.core_type = #tpu.core_type<tc>, window_params = [{transform_indices = @transform_0, window_bounds = array<i64: 16, 32>}, {transform_indices = @transform_1, window_bounds = array<i64: 16, 16>}, {pipeline_mode = #tpu.pipeline_mode<synchronous>, transform_indices = @transform_2, window_bounds = array<i64: 32, 128>}, {pipeline_mode = #tpu.pipeline_mode<synchronous>, transform_indices = @transform_3, window_bounds = array<i64: 16, 128>}, {pipeline_mode = #tpu.pipeline_mode<synchronous>, transform_indices = @transform_4, window_bounds = array<i64: 1, 128>}, {pipeline_mode = #tpu.pipeline_mode<synchronous>, transform_indices = @transform_5, window_bounds = array<i64: 128, 32>}, {pipeline_mode = #tpu.pipeline_mode<synchronous>, transform_indices = @transform_6, window_bounds = array<i64: 1, 32>}, {transform_indices = @transform_7, window_bounds = array<i64: 16, 32>}]} {
    %c0 = arith.constant 0 : index
    %c0_0 = arith.constant 0 : index
    %0 = vector.load %arg1[%c0, %c0_0] : memref<16x32xf32, #tpu.memory_space<vmem>>, vector<16x32xf32>
    %1 = arith.truncf %0 : vector<16x32xf32> to vector<16x32xbf16>
    %c0_1 = arith.constant 0 : index
    %c0_2 = arith.constant 0 : index
    %2 = vector.load %arg2[%c0_1, %c0_2] : memref<16x16xf32, #tpu.memory_space<vmem>>, vector<16x16xf32>
    %3 = arith.truncf %2 : vector<16x16xf32> to vector<16x16xbf16>
    %c0_3 = arith.constant 0 : index
    %c0_4 = arith.constant 0 : index
    %4 = vector.load %arg3[%c0_3, %c0_4] : memref<32x128xbf16, #tpu.memory_space<vmem>>, vector<32x128xbf16>
    %cst = arith.constant dense<0.000000e+00> : vector<16x128xf32>
    %5 = tpu.matmul %1, %4, %cst {dimension_numbers = #tpu.dot_dimension_numbers<[1], [0], [0], [1], [0, 0, 1, 1], [], []>} : vector<16x32xbf16>, vector<32x128xbf16>, vector<16x128xf32> -> vector<16x128xf32>
    %c0_5 = arith.constant 0 : index
    %c0_6 = arith.constant 0 : index
    %6 = vector.load %arg4[%c0_5, %c0_6] : memref<16x128xbf16, #tpu.memory_space<vmem>>, vector<16x128xbf16>
    %cst_7 = arith.constant dense<0.000000e+00> : vector<16x128xf32>
    %7 = tpu.matmul %3, %6, %cst_7 {dimension_numbers = #tpu.dot_dimension_numbers<[1], [0], [0], [1], [0, 0, 1, 1], [], []>} : vector<16x16xbf16>, vector<16x128xbf16>, vector<16x128xf32> -> vector<16x128xf32>
    %8 = arith.addf %5, %7 : vector<16x128xf32>
    %c0_8 = arith.constant 0 : index
    %c0_9 = arith.constant 0 : index
    %9 = vector.load %arg5[%c0_8, %c0_9] : memref<1x128xf32, #tpu.memory_space<vmem>>, vector<1x128xf32>
    %10 = vector.broadcast %9 : vector<1x128xf32> to vector<16x128xf32>
    %11 = arith.addf %8, %10 : vector<16x128xf32>
    %12 = arith.negf %11 : vector<16x128xf32>
    %13 = math.exp %12 : vector<16x128xf32>
    %cst_10 = arith.constant 1.000000e+00 : f32
    %14 = vector.broadcast %cst_10 : f32 to vector<16x128xf32>
    %15 = arith.addf %14, %13 : vector<16x128xf32>
    %16 = arith.divf %14, %15 : vector<16x128xf32>
    %17 = arith.truncf %16 : vector<16x128xf32> to vector<16x128xbf16>
    %c0_11 = arith.constant 0 : index
    %c0_12 = arith.constant 0 : index
    %18 = vector.load %arg6[%c0_11, %c0_12] : memref<128x32xbf16, #tpu.memory_space<vmem>>, vector<128x32xbf16>
    %cst_13 = arith.constant dense<0.000000e+00> : vector<16x32xf32>
    %19 = tpu.matmul %17, %18, %cst_13 {dimension_numbers = #tpu.dot_dimension_numbers<[1], [0], [0], [1], [0, 0, 1, 1], [], []>} : vector<16x128xbf16>, vector<128x32xbf16>, vector<16x32xf32> -> vector<16x32xf32>
    %c0_14 = arith.constant 0 : index
    %c0_15 = arith.constant 0 : index
    %20 = vector.load %arg7[%c0_14, %c0_15] : memref<1x32xf32, #tpu.memory_space<vmem>>, vector<1x32xf32>
    %21 = vector.broadcast %20 : vector<1x32xf32> to vector<16x32xf32>
    %22 = arith.addf %19, %21 : vector<16x32xf32>
    %c0_16 = arith.constant 0 : index
    %c0_17 = arith.constant 0 : index
    %23 = vector.load %arg8[%c0_16, %c0_17] : memref<16x32xf32, #tpu.memory_space<vmem>>, vector<16x32xf32>
    tpu.vector_store %arg8[%c0_16, %c0_17], %22 {strides = array<i32>} : memref<16x32xf32, #tpu.memory_space<vmem>>, vector<16x32xf32>,
    return
  }
  func.func @transform_0(%arg0: i32) -> (i32, i32) {
    %c0_i32 = arith.constant 0 : i32
    %c0_i32_0 = arith.constant 0 : i32
    return %arg0, %c0_i32 : i32, i32
  }
  func.func @transform_1(%arg0: i32) -> (i32, i32) {
    %c0_i32 = arith.constant 0 : i32
    %c0_i32_0 = arith.constant 0 : i32
    return %arg0, %c0_i32 : i32, i32
  }
  func.func @transform_2(%arg0: i32) -> (i32, i32) {
    %c0_i32 = arith.constant 0 : i32
    %c0_i32_0 = arith.constant 0 : i32
    %c0_i32_1 = arith.constant 0 : i32
    return %c0_i32, %c0_i32_0 : i32, i32
  }
  func.func @transform_3(%arg0: i32) -> (i32, i32) {
    %c0_i32 = arith.constant 0 : i32
    %c0_i32_0 = arith.constant 0 : i32
    %c0_i32_1 = arith.constant 0 : i32
    return %c0_i32, %c0_i32_0 : i32, i32
  }
  func.func @transform_4(%arg0: i32) -> (i32, i32) {
    %c0_i32 = arith.constant 0 : i32
    %c0_i32_0 = arith.constant 0 : i32
    %c0_i32_1 = arith.constant 0 : i32
    return %c0_i32, %c0_i32_0 : i32, i32
  }
  func.func @transform_5(%arg0: i32) -> (i32, i32) {
    %c0_i32 = arith.constant 0 : i32
    %c0_i32_0 = arith.constant 0 : i32
    %c0_i32_1 = arith.constant 0 : i32
    return %c0_i32, %c0_i32_0 : i32, i32
  }
  func.func @transform_6(%arg0: i32) -> (i32, i32) {
    %c0_i32 = arith.constant 0 : i32
    %c0_i32_0 = arith.constant 0 : i32
    %c0_i32_1 = arith.constant 0 : i32
    return %c0_i32, %c0_i32_0 : i32, i32
  }
  func.func @transform_7(%arg0: i32) -> (i32, i32) {
    %c0_i32 = arith.constant 0 : i32
    %c0_i32_0 = arith.constant 0 : i32
    return %arg0, %c0_i32 : i32, i32
  }
}

</mosaic_0001>

<bundles_post_ra>
// kernel: tpu_custom_call.1
= control target key start
LH: loop header
LB: loop body
LE: loop exit
PB: predicated region body
PF: predicated region fallthrough
CT: control target
= control target key end

     0   :  { %s786_s24 = smov 0   ;;  %s856_s0 = inlined_call_operand.vmem [shape: f32[64,32], index: 0, kind: input, shape index: {}]   ;;  %s857_s1 = inlined_call_operand.vmem [shape: f32[64,16], index: 1, kind: input, shape index: {}]   ;;  %s858_s2 = inlined_call_operand.vmem [shape: bf16[32,128], index: 2, kind: input, shape index: {}]   ;;  %s859_s3 = inlined_call_operand.vmem [shape: bf16[16,128], index: 3, kind: input, shape index: {}]   ;;  %s860_s4 = inlined_call_operand.vmem [shape: f32[1,128], index: 4, kind: input, shape index: {}]   ;;  %s861_s5 = inlined_call_operand.vmem [shape: bf16[128,32], index: 5, kind: input, shape index: {}]   ;;  %s862_s6 = inlined_call_operand.vmem [shape: f32[1,32], index: 6, kind: input, shape index: {}]   ;;  %s863_s7 = inlined_call_operand.vmem [shape: f32[64,32], index: 7, kind: output, shape index: {}]  }
   0x1 LB: > { %s629_s25 = sadd.s32 4294967295, %s742_s24   ;;  %p633_p0 = scmp.ge.s32.totalorder %s742_s24, 1  ;;  %s742_s24 = sphi %s786_s24, %s17_s24  }
   0x2   : > { %p249_p1 = scmp.lt.s32.totalorder %s742_s24, 5 }
   0x4   : > { %p250_p2 = pnand %p633_p0, %p249_p1 }
   0x5   : > { %s634_s28 = sshll.u32 (!%p250_p2), %s629_s25, 1 }
   0x6   : > { %253 = sbr.rel (%p250_p2) target bundleno = 460 (0x1cc), region = 48  ;;  %p287_p3 = scmp.lt.s32.totalorder (!%p250_p2), %s634_s28, 7 }
   0xb   : > { %v717_v0 = vld [vmem:[%s859_s3] sm:$0xff]   ;;  %v744_v1 = vmov 0.0   ;;  %vm745_vm0 = vmmov 0   ;;  %s865_s28 = smov (!%p287_p3, %s634_s28), 7  ;;  %vm323_vm1 = vcmask 130048   ;;  %v718_v4 = vld [vmem:[%s858_s2 + $0x8] sm:$0xff]  }
   0xc   : > { %673 = vmatprep.subr.bf16.mxu1 %v744_v1  ;;  %687 = vmatprep.subr.bf16.mxu0 %v744_v1  ;;  %s799_s29 = sshll.u32 %s865_s28, 3  ;;  %v719_v6 = vld [vmem:[%s858_s2] sm:$0xff]   ;;  %vm380_vm2 = vcmask 261120   ;;  %v720_v10 = vld [vmem:[%s861_s5 + $0x38] sm:$0xff]   ;;  %v721_v11 = vld [vmem:[%s861_s5 + $0x30] sm:$0xff]  }
   0xd   : > { %674 = vmatpush3.bf16.msra.mxu1 %v717_v0  ;;  %675 = vmatprep.mubr.msk.bf16.mxu1 %vm745_vm0, %v744_v1  ;;  %s296_s9 = scalar_lea.vmem %s857_s1, %s799_s29  ;;  %s290_s14 = scalar_lea.vmem %s856_s0, %s799_s29  ;;  %v722_v12 = vld [vmem:[%s861_s5 + $0x28] sm:$0xff]   ;;  %v723_v13 = vld [vmem:[%s861_s5 + $0x20] sm:$0xff]   ;;  %v724_v14 = vld [vmem:[%s861_s5 + $0x18] sm:$0xff]  }
   0xe   : > { %679 = vmatprep.subr.bf16.mxu1 %v744_v1  ;;  %703 = vmatprep.mubr.msk.bf16.mxu0 %vm745_vm0, %v744_v1  ;;  %v308_v2 = vld [vmem:[%s296_s9] sm:$0xff]  ;;  %v309_v3 = vld [vmem:[%s296_s9 + $0x8] sm:$0xff]  ;;  %v725_v15 = vld [vmem:[%s861_s5 + $0x10] sm:$0xff]   ;;  %s302_s18 = scalar_lea.vmem %s863_s7, %s799_s29 }
   0xf   : > { %v310_v5 = vpack.c.bf16 %v309_v3, %v308_v2  ;;  %v305_v7 = vld [vmem:[%s290_s14] sm:$0xff]  ;;  %v306_v8 = vld [vmem:[%s290_s14 + $0x8] sm:$0xff]  ;;  %688 = vmatpush3.bf16.msra.mxu0 %v720_v10 }
  0x10   : > { %v307_v9 = vpack.c.bf16 %v306_v8, %v305_v7  ;;  %689 = vmatprep.subr.bf16.mxu0 %v744_v1  ;;  %v726_v16 = vld [vmem:[%s861_s5 + $0x8] sm:$0xff]   ;;  %v727_v17 = vld [vmem:[%s861_s5] sm:$0xff]  }
  0x11   : > { %676 = vmatmul.mubr.msk.bf16.vlgmr.msra.gmra.mxu1 %vm323_vm1, %v310_v5  ;;  %v645_v23 = vld [vmem:[%s860_s4] ss:$0 sm:$0xff] }
  0x12   : > { %680 = vmatpush3.bf16.msra.mxu1 %v718_v4  ;;  %683 = vmatprep.mubr.msk.bf16.mxu1 %vm745_vm0, %v744_v1  ;;  %v648_v40 = vld [vmem:[%s862_s6] ss:$0 sm:$0xff] }
  0x13   : > { %681 = vmatprep.subr.bf16.mxu1 %v744_v1  ;;  %690 = vmatpush3.bf16.msra.mxu0 %v721_v11 }
  0x14   : > { %691 = vmatprep.subr.bf16.mxu0 %v744_v1 }
  0x16   : > { %682 = vmatpush3.bf16.msra.mxu1 %v719_v6 }
  0x17   : > { %692 = vmatpush3.bf16.msra.mxu0 %v722_v12 }
  0x18   : > { %693 = vmatprep.subr.bf16.mxu0 %v744_v1 }
  0x19   : > { %684 = vmatmul.mubr.msk.bf16.vlgmr.msra.gmra.mxu1 %vm380_vm2, %v307_v9 }
  0x1b   : > { %694 = vmatpush3.bf16.msra.mxu0 %v723_v13 }
  0x1c   : > { %695 = vmatprep.subr.bf16.mxu0 %v744_v1 }
  0x1f   : > { %696 = vmatpush3.bf16.msra.mxu0 %v724_v14 }
  0x20   : > { %697 = vmatprep.subr.bf16.mxu0 %v744_v1 }
  0x23   : > { %698 = vmatpush3.bf16.msra.mxu0 %v725_v15 }
  0x24   : > { %699 = vmatprep.subr.bf16.mxu0 %v744_v1 }
  0x27   : > { %700 = vmatpush3.bf16.msra.mxu0 %v726_v16 }
  0x28   : > { %701 = vmatprep.subr.bf16.mxu0 %v744_v1 }
  0x2b   : > { %702 = vmatpush3.bf16.msra.mxu0 %v727_v17 }
  0xd1   : > { %v361_v18 = vpop.f32.mrf.mxu1 }
  0xd3   : > { %v677_v19 = vpop.f32.mrf.mxu1 }
  0xd5   : > { %v364_v20 = vpop.f32.mrf.mxu1 }
  0xd7   : > { %v678_v21 = vpop.f32.mrf.mxu1 }
  0xd9   : > { %v418_v22 = vpop.f32.mrf.mxu1 }
  0xda   : > { %v419_v24 = vadd.f32 %v418_v22, %v361_v18 }
  0xdb   : > { %v685_v25 = vpop.f32.mrf.mxu1 }
  0xdc   : > { %v432_v26 = vadd.f32 %v645_v23, %v419_v24 }
  0xdd   : > { %v421_v27 = vpop.f32.mrf.mxu1 }
  0xde   : > { %v646_v28 = vmul.f32 -1.442695, %v432_v26  ;;  %v422_v29 = vadd.f32 %v421_v27, %v364_v20 }
  0xdf   : > { %v686_v30 = vpop.f32.mrf.mxu1 }
  0xe0   : > { %728 = vpow2.f32 %v646_v28  ;;  %v433_v31 = vadd.f32 %v645_v23, %v422_v29 }
  0xe2   : > { %v647_v32 = vmul.f32 -1.442695, %v433_v31 }
  0xe4   : > { %730 = vpow2.f32 %v647_v32 }
  0xed   : > { %v729_v33 = vpop.eup %728 }
  0xee   : > { %v440_v34 = vadd.f32 1.0, %v729_v33 }
  0xf0   : > { %732 = vrcp.f32 %v440_v34 }
  0xf1   : > { %v731_v35 = vpop.eup %730 }
  0xf2   : > { %v441_v36 = vadd.f32 1.0, %v731_v35 }
  0xf4   : > { %734 = vrcp.f32 %v441_v36 }
  0xfd   : > { %v733_v37 = vpop.eup %732 }
 0x101   : > { %v735_v38 = vpop.eup %734 }
 0x102   : > { %v446_v39 = vpack.c.bf16 %v735_v38, %v733_v37 }
 0x104   : > { %704 = vmatmul.mubr.bf16.vlgmr.msra.gmra.mxu0 %v446_v39 }
 0x1c4   : > { %v552_v41 = vpop.f32.mrf.mxu0 }
 0x1c5   : > { %v553_v42 = vadd.f32 %v648_v40, %v552_v41 }
 0x1c6   : > { %v705_v43 = vpop.f32.mrf.mxu0 }
 0x1c7   : > { %559 = vst.msk [vmem:[%s302_s18] sm:$0xff] %vm380_vm2, %v553_v42 }
 0x1c8   : > { %v555_v44 = vpop.f32.mrf.mxu0 }
 0x1c9   : > { %v556_v45 = vadd.f32 %v648_v40, %v555_v44 }
 0x1ca   : > { %v706_v46 = vpop.f32.mrf.mxu0 }
 0x1cb   : > { %560 = vst.msk [vmem:[%s302_s18 + $0x8] sm:$0xff] %vm380_vm2, %v556_v45 }
 0x1cc PF: > { %s17_s24 = sadd.s32 1, %s742_s24  }
 0x1cd   : > { %p14_p4 = scmp.ge.s32.totalorder %s17_s24, 6  }
 0x1cf   :  { %16 = sbr.rel (!%p14_p4) target bundleno = 1 (0x1), region = 81 }

</bundles_post_ra>
